<compile_context>
chip_gen: v7x
topology: tpu7x:2x2x1
jax: 0.10.0
libtpu: 0.0.40
codegen_flags: <defaults>
</compile_context>

<pallas_src>
from dataclasses import dataclass

import jax
import jax.numpy as jnp
from jax.experimental import pallas as pl
from jax.experimental.pallas import tpu as pltpu


@dataclass
class Config:
    d_vocab: int = 64
    d_model: int = 128
    init_range: float = 0.02


NSEM = 8  # number of row DMAs kept in flight


def _round_up(x: int, m: int) -> int:
    return ((x + m - 1) // m) * m


def embed_gather_kernel(tok_ref, w_hbm, o_ref, buf, sems):
    # tok_ref: SMEM (N_pad,) int32   -- scalar-prefetched token ids
    # w_hbm:   HBM  (V, D)           -- embedding table (never fully resident)
    # o_ref:   VMEM (rows, D)        -- output block for this row tile
    # buf:     VMEM (rows, D)        -- DMA landing buffer
    # sems:    DMA semaphores (NSEM,)
    rows = buf.shape[0]
    base = pl.program_id(0) * rows

    def start_row(r, slot):
        tok = tok_ref[base + r]
        pltpu.make_async_copy(
            w_hbm.at[pl.ds(tok, 1), :],
            buf.at[pl.ds(r, 1), :],
            sems.at[slot],
        ).start()

    def wait_slot(slot):
        # Descriptor only needs the (identical) copy size for the wait.
        pltpu.make_async_copy(
            w_hbm.at[pl.ds(0, 1), :],
            buf.at[pl.ds(0, 1), :],
            sems.at[slot],
        ).wait()

    # Prologue: fill the DMA pipeline (rows >= NSEM by construction).
    @pl.loop(0, NSEM)
    def _(r):
        start_row(r, r)

    # Steady state: free a slot (wait for the copy issued NSEM rows ago),
    # then reuse it for the next row.
    @pl.loop(NSEM, rows)
    def _(r):
        slot = r % NSEM
        wait_slot(slot)
        start_row(r, slot)

    # Drain the remaining in-flight copies (rows % NSEM == 0 -> exactly NSEM).
    @pl.loop(0, NSEM)
    def _(slot):
        wait_slot(slot)

    # One lane-dense full-tile store to the pipelined output block.
    o_ref[...] = buf[...]


@jax.jit
def embed(tokens, W_E):
    B, P = tokens.shape
    V, D = W_E.shape
    N = B * P

    # Row tile: multiple of 8 (f32 sublane packing), capped at 128 rows, and
    # chosen so there are >= 2 grid steps whenever N > 8 (v7x megacore).
    tile = min(128, _round_up(max(-(-N // 2), 1), 8))
    assert tile % NSEM == 0
    N_pad = _round_up(N, tile)
    num_tiles = N_pad // tile

    # Clamp (matches jnp.take semantics, guards the row DMA) and pad.
    tok_flat = jnp.clip(tokens.reshape(N).astype(jnp.int32), 0, V - 1)
    if N_pad != N:
        tok_flat = jnp.pad(tok_flat, (0, N_pad - N))  # pad rows gather W_E[0]

    itemsize = jnp.dtype(W_E.dtype).itemsize
    needed = 3 * tile * D * itemsize  # 2x output block (double-buffered) + scratch
    vmem_limit = min(max(needed + (8 << 20), 32 << 20), 64 << 20)

    out_flat = pl.pallas_call(
        embed_gather_kernel,
        out_shape=jax.ShapeDtypeStruct((N_pad, D), W_E.dtype),
        grid_spec=pltpu.PrefetchScalarGridSpec(
            num_scalar_prefetch=1,            # token ids -> SMEM
            grid=(num_tiles,),
            in_specs=[
                pl.BlockSpec(memory_space=pl.ANY),  # W_E stays in HBM
            ],
            out_specs=pl.BlockSpec((tile, D), lambda i, tok: (i, 0)),
            scratch_shapes=[
                pltpu.VMEM((tile, D), W_E.dtype),
                pltpu.SemaphoreType.DMA((NSEM,)),
            ],
        ),
        compiler_params=pltpu.CompilerParams(
            dimension_semantics=("parallel",),   # independent row tiles
            vmem_limit_bytes=int(vmem_limit),
        ),
    )(tok_flat, W_E)

    return out_flat[:N].reshape(B, P, D)


if __name__ == "__main__":
    cfg = Config(d_vocab=64, d_model=128, init_range=0.02)
    batch, position = 2, 8

    key = jax.random.PRNGKey(0)
    k_w, k_tok = jax.random.split(key)

    # Deterministic parameter init, matching nn.init.normal_(std=init_range).
    W_E = (jax.random.normal(k_w, (cfg.d_vocab, cfg.d_model), dtype=jnp.float32)
           * cfg.init_range)
    tokens = jax.random.randint(k_tok, (batch, position), 0, cfg.d_vocab,
                                dtype=jnp.int32)

    out = jax.block_until_ready(embed(tokens, W_E))

    # Reference: W_E[tokens]
    ref = jnp.take(W_E, tokens, axis=0)
    assert out.shape == (batch, position, cfg.d_model)
    assert out.dtype == W_E.dtype
    assert bool(jnp.array_equal(out, ref)), "mismatch vs reference gather"

    print("KERNEL_OK")
</pallas_src>

<mosaic_0001>
module attributes {stable_mosaic.version = 11 : i64} {
  func.func @embed_gather_kernel(%arg0: i32, %arg1: memref<16xi32, #tpu.memory_space<smem>>, %arg2: memref<64x128xf32, #tpu.memory_space<any>>, %arg3: memref<8x128xf32, #tpu.memory_space<vmem>>, %arg4: memref<8x128xf32, #tpu.memory_space<vmem>>, %arg5: memref<8x!tpu.dma_semaphore, #tpu.memory_space<semaphore_mem>>) attributes {dimension_semantics = [#tpu.dimension_semantics<parallel>], iteration_bounds = array<i64: 2>, scalar_prefetch = 1 : i64, scratch_operands = 2 : i64, tpu.core_type = #tpu.core_type<tc>, window_params = [{}, {transform_indices = @transform_1, window_bounds = array<i64: 8, 128>}]} {
    %c8_i32 = arith.constant 8 : i32
    %0 = arith.muli %arg0, %c8_i32 : i32
    %c0_i32 = arith.constant 0 : i32
    %c8_i32_0 = arith.constant 8 : i32
    %1 = arith.addi %c0_i32, %c8_i32_0 : i32
    %c1_i32 = arith.constant 1 : i32
    scf.for %arg6 = %c0_i32 to %1 step %c1_i32  : i32 {
      %c1_i32_13 = arith.constant 1 : i32
      %6 = arith.muli %arg6, %c1_i32_13 : i32
      %c0_i32_14 = arith.constant 0 : i32
      %7 = arith.addi %c0_i32_14, %6 : i32
      %8 = arith.addi %0, %7 : i32
      %9 = arith.index_cast %8 : i32 to index
      %10 = memref.load %arg1[%9] : memref<16xi32, #tpu.memory_space<smem>>
      %c0_i32_15 = arith.constant 0 : i32
      %11 = tpu.memref_slice %arg2[%10, %c0_i32_15] : memref<64x128xf32, #tpu.memory_space<any>> -> memref<1x128xf32, #tpu.memory_space<any>>
      %c0_i32_16 = arith.constant 0 : i32
      %12 = tpu.memref_slice %arg4[%7, %c0_i32_16] : memref<8x128xf32, #tpu.memory_space<vmem>> -> memref<1x128xf32, #tpu.memory_space<vmem>>
      %13 = tpu.memref_slice %arg5[%7] : memref<8x!tpu.dma_semaphore, #tpu.memory_space<semaphore_mem>> -> memref<1x!tpu.dma_semaphore, #tpu.memory_space<semaphore_mem>>
      %14 = tpu.memref_squeeze %13 : memref<1x!tpu.dma_semaphore, #tpu.memory_space<semaphore_mem>> -> memref<!tpu.dma_semaphore, #tpu.memory_space<semaphore_mem>>
      tpu.enqueue_dma source(%11 : memref<1x128xf32, #tpu.memory_space<any>>) target(%12 : memref<1x128xf32, #tpu.memory_space<vmem>>) target_semaphore(%14 : memref<!tpu.dma_semaphore, #tpu.memory_space<semaphore_mem>>)
    }
    %c8_i32_1 = arith.constant 8 : i32
    %c0_i32_2 = arith.constant 0 : i32
    %c0_i32_3 = arith.constant 0 : i32
    %2 = arith.addi %c0_i32_2, %c0_i32_3 : i32
    %c1_i32_4 = arith.constant 1 : i32
    scf.for %arg6 = %c0_i32_2 to %2 step %c1_i32_4  : i32 {
      %c1_i32_13 = arith.constant 1 : i32
      %6 = arith.muli %arg6, %c1_i32_13 : i32
      %c8_i32_14 = arith.constant 8 : i32
      %7 = arith.addi %c8_i32_14, %6 : i32
      %c8_i32_15 = arith.constant 8 : i32
      %c0_i32_16 = arith.constant 0 : i32
      %8 = arith.cmpi eq, %c8_i32_15, %c0_i32_16 : i32
      %c1_i32_17 = arith.constant 1 : i32
      %9 = arith.select %8, %c1_i32_17, %c8_i32_15 : i32
      %10 = arith.remsi %7, %9 : i32
      %c0_i32_18 = arith.constant 0 : i32
      %11 = arith.cmpi ne, %10, %c0_i32_18 : i32
      %c0_i32_19 = arith.constant 0 : i32
      %12 = arith.cmpi slt, %10, %c0_i32_19 : i32
      %c0_i32_20 = arith.constant 0 : i32
      %13 = arith.cmpi slt, %9, %c0_i32_20 : i32
      %14 = arith.xori %12, %13 : i1
      %15 = arith.andi %14, %11 : i1
      %16 = arith.addi %10, %9 : i32
      %17 = arith.select %15, %16, %10 : i32
      %c0_i32_21 = arith.constant 0 : i32
      %c0_i32_22 = arith.constant 0 : i32
      %18 = tpu.memref_slice %arg2[%c0_i32_21, %c0_i32_22] : memref<64x128xf32, #tpu.memory_space<any>> -> memref<1x128xf32, #tpu.memory_space<any>>
      %c0_i32_23 = arith.constant 0 : i32
      %c0_i32_24 = arith.constant 0 : i32
      %19 = tpu.memref_slice %arg4[%c0_i32_23, %c0_i32_24] : memref<8x128xf32, #tpu.memory_space<vmem>> -> memref<1x128xf32, #tpu.memory_space<vmem>>
      %20 = tpu.memref_slice %arg5[%17] : memref<8x!tpu.dma_semaphore, #tpu.memory_space<semaphore_mem>> -> memref<1x!tpu.dma_semaphore, #tpu.memory_space<semaphore_mem>>
      %21 = tpu.memref_squeeze %20 : memref<1x!tpu.dma_semaphore, #tpu.memory_space<semaphore_mem>> -> memref<!tpu.dma_semaphore, #tpu.memory_space<semaphore_mem>>
      tpu.wait_dma2 semaphore(%21 : memref<!tpu.dma_semaphore, #tpu.memory_space<semaphore_mem>>) src(%18 : memref<1x128xf32, #tpu.memory_space<any>>) dst(%19 : memref<1x128xf32, #tpu.memory_space<vmem>>)
      %22 = arith.addi %0, %7 : i32
      %23 = arith.index_cast %22 : i32 to index
      %24 = memref.load %arg1[%23] : memref<16xi32, #tpu.memory_space<smem>>
      %c0_i32_25 = arith.constant 0 : i32
      %25 = tpu.memref_slice %arg2[%24, %c0_i32_25] : memref<64x128xf32, #tpu.memory_space<any>> -> memref<1x128xf32, #tpu.memory_space<any>>
      %c0_i32_26 = arith.constant 0 : i32
      %26 = tpu.memref_slice %arg4[%7, %c0_i32_26] : memref<8x128xf32, #tpu.memory_space<vmem>> -> memref<1x128xf32, #tpu.memory_space<vmem>>
      %27 = tpu.memref_slice %arg5[%17] : memref<8x!tpu.dma_semaphore, #tpu.memory_space<semaphore_mem>> -> memref<1x!tpu.dma_semaphore, #tpu.memory_space<semaphore_mem>>
      %28 = tpu.memref_squeeze %27 : memref<1x!tpu.dma_semaphore, #tpu.memory_space<semaphore_mem>> -> memref<!tpu.dma_semaphore, #tpu.memory_space<semaphore_mem>>
      tpu.enqueue_dma source(%25 : memref<1x128xf32, #tpu.memory_space<any>>) target(%26 : memref<1x128xf32, #tpu.memory_space<vmem>>) target_semaphore(%28 : memref<!tpu.dma_semaphore, #tpu.memory_space<semaphore_mem>>)
    }
    %c0_i32_5 = arith.constant 0 : i32
    %c0_i32_6 = arith.constant 0 : i32
    %c8_i32_7 = arith.constant 8 : i32
    %3 = arith.addi %c0_i32_6, %c8_i32_7 : i32
    %c1_i32_8 = arith.constant 1 : i32
    scf.for %arg6 = %c0_i32_6 to %3 step %c1_i32_8  : i32 {
      %c1_i32_13 = arith.constant 1 : i32
      %6 = arith.muli %arg6, %c1_i32_13 : i32
      %c0_i32_14 = arith.constant 0 : i32
      %7 = arith.addi %c0_i32_14, %6 : i32
      %c0_i32_15 = arith.constant 0 : i32
      %c0_i32_16 = arith.constant 0 : i32
      %8 = tpu.memref_slice %arg2[%c0_i32_15, %c0_i32_16] : memref<64x128xf32, #tpu.memory_space<any>> -> memref<1x128xf32, #tpu.memory_space<any>>
      %c0_i32_17 = arith.constant 0 : i32
      %c0_i32_18 = arith.constant 0 : i32
      %9 = tpu.memref_slice %arg4[%c0_i32_17, %c0_i32_18] : memref<8x128xf32, #tpu.memory_space<vmem>> -> memref<1x128xf32, #tpu.memory_space<vmem>>
      %10 = tpu.memref_slice %arg5[%7] : memref<8x!tpu.dma_semaphore, #tpu.memory_space<semaphore_mem>> -> memref<1x!tpu.dma_semaphore, #tpu.memory_space<semaphore_mem>>
      %11 = tpu.memref_squeeze %10 : memref<1x!tpu.dma_semaphore, #tpu.memory_space<semaphore_mem>> -> memref<!tpu.dma_semaphore, #tpu.memory_space<semaphore_mem>>
      tpu.wait_dma2 semaphore(%11 : memref<!tpu.dma_semaphore, #tpu.memory_space<semaphore_mem>>) src(%8 : memref<1x128xf32, #tpu.memory_space<any>>) dst(%9 : memref<1x128xf32, #tpu.memory_space<vmem>>)
    }
    %c8_i32_9 = arith.constant 8 : i32
    %c0 = arith.constant 0 : index
    %c0_10 = arith.constant 0 : index
    %4 = vector.load %arg4[%c0, %c0_10] : memref<8x128xf32, #tpu.memory_space<vmem>>, vector<8x128xf32>
    %c0_11 = arith.constant 0 : index
    %c0_12 = arith.constant 0 : index
    %5 = vector.load %arg3[%c0_11, %c0_12] : memref<8x128xf32, #tpu.memory_space<vmem>>, vector<8x128xf32>
    tpu.vector_store %arg3[%c0_11, %c0_12], %4 {strides = array<i32>} : memref<8x128xf32, #tpu.memory_space<vmem>>, vector<8x128xf32>,
    return
  }
  func.func @transform_1(%arg0: i32, %arg1: memref<16xi32, #tpu.memory_space<smem>>) -> (i32, i32) {
    %c0_i32 = arith.constant 0 : i32
    %c0_i32_0 = arith.constant 0 : i32
    return %arg0, %c0_i32 : i32, i32
  }
}

</mosaic_0001>

<bundles_post_ra>
// kernel: embed.1
= control target key start
LH: loop header
LB: loop body
LE: loop exit
PB: predicated region body
PF: predicated region fallthrough
CT: control target
= control target key end

     0   :  { %s525_s0 = inlined_call_operand.vmem [shape: s32[16], index: 0, kind: input, shape index: {}]   ;;  %s526_s1 = inlined_call_operand.hbm [shape: f32[64,128], index: 1, kind: input, shape index: {}]   ;;  %s527_s2 = inlined_call_operand.hbm [shape: f32[16,128], index: 2, kind: output, shape index: {}]  }
   0x1   :  { %s7_s11 = sshll.u32 %s525_s0, 4  ;;  %s8_s11 = int_to_ptr.vmem [resolvable:$true] %s7_s11 }
   0x2   :  { %s283_s12 = scalar_lea.vmem %s8_s11, 16  ;;  %p288_p1 = scmp.lt.s32.totalorder %s8_s11, %s8_s11 }
   0x3   :  { %p284_p0 = scmp.ne.s32.totalorder %s8_s11, %s283_s12  ;;  %p289_p2 = scmp.lt.s32.totalorder %s283_s12, %s283_s12 }
   0x5   :  { %p290_p3 = por %p289_p2, %p288_p1 }
   0x7   :  { %p291_p4 = pnand %p290_p3, %p284_p0 }
   0x9   :  { %294 = shalt.err (!%p291_p4)  }
   0xa   :  { %s395_s13 = smov [#allocation5]  }
   0xb   :  { %10 = dma.vmem_to_smem %s8_s11, 16, %s395_s13, [#allocation4] }
   0xc   :  { %367 = dma.done.wait [#allocation4], 16 }
   0xd   :  { %368 = vsyncadd [#allocation4], 4294967280 }
   0xe   :  { %12 = sfence }
   0xf   :  { %13 = vsyncpa [#allocation7], 0 }
  0x10   :  { %15 = vsyncpa [#allocation7 + $0x1], 0  ;;  %s416_s14 = smov 0   ;;  %s418_s15 = smov 0  }
  0x11   :  { %s420_s0 = smov 0  }
  0x12 LB: > { %s217_s16 = sadd.s32 4294967295, %s385_s0   ;;  %s433_s17 = sadd.s32 1, %s385_s0   ;;  %s385_s0 = sphi %s420_s0, %s533_s0   ;;  %s381_s15 = sphi %s418_s15, %s532_s15   ;;  %s377_s14 = sphi %s416_s14, %s531_s14  }
  0x13   : > { %s24_s18 = ssub.s32 %s385_s0, %s433_s17  ;;  %s27_s19 = sadd.s32 1, %s381_s15 }
  0x14   : > { %p25_p5 = scmp.eq.s32.totalorder %s24_s18, 0  ;;  %p218_p6 = scmp.ne.s32.totalorder %s24_s18, 0 }
  0x15   : > { %p31_p7 = scmp.eq.s32.totalorder %s385_s0, 1  ;;  %p36_p8 = scmp.ne.s32.totalorder %s381_s15, %s377_s14 }
  0x16   : > { %s442_s20 = scalar_select %p25_p5, %s381_s15, %s27_s19  }
  0x17   : > { %p444_p9 = por %p218_p6, %p31_p7  ;;  %p37_p10 = scmp.eq.s32.totalorder %s217_s16, 1 }
  0x18   : > { %p219_p12 = scmp.ge.s32.totalorder %s385_s0, 2 }
  0x19   : > { %p448_p11 = por %p37_p10, %p36_p8  ;;  %s51_s23 = sand.u32 (!%p219_p12), 1, %s381_s15  }
  0x1a   : > { %46 = sbr.rel (%p219_p12) target bundleno = 102 (0x66), region = 12  ;;  %s221_s24 = sshll.u32 (!%p219_p12), %s385_s0, 3 }
  0x1b   : > { %s529_s22 = scalar_select %p448_p11, 1, 0 }
  0x1c   : > { %s457_s25 = sshll.u32 (!%p219_p12), %s51_s23, 3  ;;  %s460_s27 = smov (!%p219_p12), 0  }
  0x1d   : > { %s53_s26 = scalar_lea.vmem (!%p219_p12), [#allocation6], %s457_s25 }
  0x21 LB: >> { %s61_s28 = sadd.s32 %s389_s27, %s221_s24  ;;  %s65_s30 = scalar_lea.vmem [#allocation2], %s389_s27  ;;  %s389_s27 = sphi %s460_s27, %s60_s27  }
  0x22   : >> { %s62_s29 = sld [smem:[#allocation5 + %s61_s28]]  ;;  %s74_s3 = sshll.u32 %s65_s30, 4  ;;  %s75_s3 = int_to_ptr.vmem [resolvable:$true] %s74_s3 }
  0x23   : >> { %s66_s8 = scalar_lea.sflag [#allocation3], %s389_s27  ;;  %s297_s12 = scalar_lea.hbm %s526_s1, 1024 }
  0x28   : >> { %s222_s4 = sshll.u32 %s62_s29, 4 }
  0x29   : >> { %s64_s7 = scalar_lea.hbm %s526_s1, %s222_s4 }
  0x2a   : >> { %s295_s9 = scalar_lea.hbm %s64_s7, 16  ;;  %p298_p0 = scmp.lt.u32.totalorder %s64_s7, %s526_s1 }
  0x2b   : >> { %p296_p13 = scmp.ne.s32.totalorder %s64_s7, %s295_s9  ;;  %p299_p1 = scmp.lt.u32.totalorder %s297_s12, %s295_s9 }
  0x2c   : >> { %p301_p3 = scmp.lt.u32.totalorder %s295_s9, %s64_s7 }
  0x2d   : >> { %p300_p2 = por %p299_p1, %p298_p0 }
  0x2f   : >> { %p302_p4 = por %p301_p3, %p300_p2 }
  0x31   : >> { %p303_p5 = pnand %p302_p4, %p296_p13 }
  0x33   : >> { %306 = shalt.err (!%p303_p5)  }
  0x34   : >> { %s307_s18 = scalar_lea.vmem %s75_s3, 16  ;;  %s396_s19 = smov [#allocation2]  }
  0x35   : >> { %p308_p6 = scmp.ne.s32.totalorder %s75_s3, %s307_s18  ;;  %s309_s28 = sshll.u32 %s396_s19, 4  ;;  %s310_s28 = int_to_ptr.vmem [resolvable:$false] %s309_s28 }
  0x36   : >> { %s311_s29 = scalar_lea.vmem %s310_s28, 128  ;;  %p312_p7 = scmp.lt.s32.totalorder %s75_s3, %s310_s28 }
  0x37   : >> { %p313_p8 = scmp.lt.s32.totalorder %s311_s29, %s307_s18 }
  0x39   : >> { %p314_p10 = por %p313_p8, %p312_p7 }
  0x3b   : >> { %p315_p12 = pnand %p314_p10, %p308_p6 }
  0x3d   : >> { %318 = shalt.err (!%p315_p12)  }
  0x3e   : >> { %77 = dma.hbm_to_vmem [thread:$0]  %s64_s7, 16, %s75_s3, %s66_s8 }
  0x3f   : >> { %s60_s27 = sadd.s32 1, %s389_s27  }
  0x40   : >> { %p57_p11 = scmp.ge.s32.totalorder %s60_s27, 8  }
  0x41   : > { %s391_s30 = smov (%p57_p11), 0  }
  0x42   : > { %59 = sbr.rel (!%p57_p11) target bundleno = 33 (0x21), region = 73 }
  0x49 LB: >> { %s84_s4 = scalar_lea.sflag [#allocation3], %s393_s30  ;;  %s393_s30 = sphi %s391_s30, %s83_s30  }
  0x4a   : >> { %369 = dma.done.wait %s84_s4, 16 }
  0x4b   : >> { %370 = vsyncadd %s84_s4, 4294967280  ;;  %s83_s30 = sadd.s32 1, %s393_s30  }
  0x4c   : >> { %p80_p13 = scmp.ge.s32.totalorder %s83_s30, 8  }
  0x4d   : > { %v88_v0 = vld [vmem:[#allocation2] sm:$0xff] (%p80_p13)  ;;  %s224_s3 = sshll.u32 (%p80_p13), %s385_s0, 7  ;;  %s104_s6 = sshll.u32 (%p80_p13), %s53_s26, 4  ;;  %s105_s6 = int_to_ptr.vmem [resolvable:$true] %s104_s6 }
  0x4e   : > { %82 = sbr.rel (!%p80_p13) target bundleno = 73 (0x49), region = 84  ;;  %89 = vst [vmem:[%s53_s26] sm:$0xff] (%p80_p13), %v88_v0  ;;  %s488_s5 = scalar_lea.hbm (%p80_p13), %s527_s2, %s224_s3 }
  0x4f   : > { %s91_s7 = scalar_lea.sflag (%p80_p13), [#allocation7], %s51_s23  ;;  %s319_s8 = scalar_lea.vmem (%p80_p13), %s105_s6, 128 }
  0x50   : > { %p320_p11 = scmp.ne.s32.totalorder (%p80_p13), %s105_s6, %s319_s8  ;;  %s397_s9 = smov (%p80_p13), [#allocation6]  }
  0x51   : > { %s323_s10 = sshll.u32 (%p80_p13), %s397_s9, 4  ;;  %s324_s10 = int_to_ptr.vmem [resolvable:$false] %s323_s10 }
  0x52   : > { %p321_p0 = pnand (%p80_p13), %p320_p11, %p444_p9  ;;  %s325_s11 = scalar_lea.vmem (%p80_p13), %s324_s10, 256 }
  0x53   : > { %p326_p2 = scmp.lt.s32.totalorder (%p80_p13), %s105_s6, %s324_s10  ;;  %p327_p3 = scmp.lt.s32.totalorder (%p80_p13), %s325_s11, %s319_s8 }
  0x54   : > { %p322_p1 = pneg (%p80_p13), %p321_p0 }
  0x55   : > { %p328_p4 = por %p327_p3, %p326_p2 }
  0x57   : > { %p329_p5 = pnand %p328_p4, %p322_p1 }
  0x59   : > { %332 = shalt.err (!%p329_p5)
}
  0x5a   : > { %s333_s23 = scalar_lea.hbm %s488_s5, 128  ;;  %s337_s12 = scalar_lea.hbm %s527_s2, 256 }
  0x5b   : > { %p334_p6 = scmp.ne.s32.totalorder %s488_s5, %s333_s23  ;;  %p338_p10 = scmp.lt.u32.totalorder %s488_s5, %s527_s2 }
  0x5c   : > { %p339_p12 = scmp.lt.u32.totalorder %s337_s12, %s333_s23  ;;  %p341_p11 = scmp.lt.u32.totalorder %s333_s23, %s488_s5 }
  0x5d   : > { %p335_p7 = pnand %p334_p6, %p444_p9 }
  0x5e   : > { %p340_p13 = por %p339_p12, %p338_p10 }
  0x5f   : > { %p336_p8 = pneg %p335_p7 }
  0x60   : > { %p342_p0 = por %p341_p11, %p340_p13 }
  0x62   : > { %p343_p1 = pnand %p342_p0, %p336_p8 }
  0x64   : > { %346 = shalt.err (!%p343_p1)
}
  0x65   : > { %235 = dma.vmem_to_hbm [thread:$0]  (%p444_p9), %s105_s6, 128, %s488_s5, %s91_s7  }
  0x66 PF: > { %p241_p2 = scmp.ge.s32.totalorder %s385_s0, 1  ;;  %s116_s18 = sand.u32 1, %s377_s14  }
  0x67   : > { %p530_p3 = scmp.ne.s32.totalorder %s529_s22, 0  ;;  %s117_s19 = scalar_lea.sflag [#allocation7], %s116_s18 }
  0x69   : > { %p238_p4 = pnand %p241_p2, %p530_p3 }
  0x6b   : > { %372 = dma.done.wait (!%p238_p4), %s117_s19, 128  }
  0x6c   : > { %374 = vsyncadd (!%p238_p4), %s117_s19, 4294967168  ;;  %p18_p5 = scmp.ge.s32.totalorder %s433_s17, 3   ;;  %s531_s14 = smov %s381_s15 }
  0x6d   : > { %s532_s15 = smov %s442_s20  ;;  %s533_s0 = smov %s433_s17 }
  0x6e   :  { %20 = sbr.rel (!%p18_p5) target bundleno = 18 (0x12), region = 95 }
  0x75   :  { %122 = vsyncpa [#allocation7], 1 }
  0x76   :  { %124 = vsyncpa [#allocation7 + $0x1], 1 }
  0x77   :  { %125 = vsyncmov [#allocation3] }
  0x7a   :  { %s126_s0 = vpop.sfrf %125 }
  0x7b   :  { %p227_p9 = scmp.ne.s32.totalorder %s126_s0, 0 }
  0x7d   :  { %130 = shalt.err (%p227_p9)  }
  0x7e   :  { %132 = vsyncmov [#allocation3 + $0x1] }
  0x81   :  { %s133_s21 = vpop.sfrf %132 }
  0x82   :  { %p228_p6 = scmp.ne.s32.totalorder %s133_s21, 0 }
  0x84   :  { %137 = shalt.err (%p228_p6)  }
  0x85   :  { %139 = vsyncmov [#allocation3 + $0x2] }
  0x88   :  { %s140_s22 = vpop.sfrf %139 }
  0x89   :  { %p229_p7 = scmp.ne.s32.totalorder %s140_s22, 0 }
  0x8b   :  { %144 = shalt.err (%p229_p7)  }
  0x8c   :  { %146 = vsyncmov [#allocation3 + $0x3] }
  0x8f   :  { %s147_s28 = vpop.sfrf %146 }
  0x90   :  { %p230_p8 = scmp.ne.s32.totalorder %s147_s28, 0 }
  0x92   :  { %151 = shalt.err (%p230_p8)  }
  0x93   :  { %153 = vsyncmov [#allocation3 + $0x4] }
  0x96   :  { %s154_s17 = vpop.sfrf %153 }
  0x97   :  { %p231_p10 = scmp.ne.s32.totalorder %s154_s17, 0 }
  0x99   :  { %158 = shalt.err (%p231_p10)  }
  0x9a   :  { %160 = vsyncmov [#allocation3 + $0x5] }
  0x9d   :  { %s161_s1 = vpop.sfrf %160 }
  0x9e   :  { %p232_p12 = scmp.ne.s32.totalorder %s161_s1, 0 }
  0xa0   :  { %165 = shalt.err (%p232_p12)  }
  0xa1   :  { %167 = vsyncmov [#allocation3 + $0x6] }
  0xa4   :  { %s168_s2 = vpop.sfrf %167 }
  0xa5   :  { %p233_p13 = scmp.ne.s32.totalorder %s168_s2, 0 }
  0xa7   :  { %172 = shalt.err (%p233_p13)  }
  0xa8   :  { %174 = vsyncmov [#allocation3 + $0x7] }
  0xab   :  { %s175_s14 = vpop.sfrf %174 }
  0xac   :  { %p234_p11 = scmp.ne.s32.totalorder %s175_s14, 0 }
  0xae   :  { %179 = shalt.err (%p234_p11)  }

</bundles_post_ra>
